<compile_context>
chip_gen: v6e
topology: v6e:2x2x1
jax: 0.10.0
libtpu: 0.0.40
codegen_flags: <defaults>
</compile_context>

<pallas_src>
import functools

import jax
import jax.numpy as jnp
from jax.experimental import pallas as pl
from jax.experimental.pallas import tpu as pltpu


# ---------------------------------------------------------------------------
# Kernels
# ---------------------------------------------------------------------------
def fused_gcn_kernel(a_ref, x_ref, w1_ref, b1_ref, w2_ref, b2_ref, o_ref):
    """Whole 2-layer GCN forward, fully resident in VMEM (small-N path)."""
    a = a_ref[...]
    xw1 = jnp.dot(x_ref[...], w1_ref[...],
                  preferred_element_type=jnp.float32).astype(jnp.bfloat16)
    h1 = jnp.dot(a, xw1, preferred_element_type=jnp.float32) + b1_ref[...]
    h1 = jnp.maximum(h1, 0.0).astype(jnp.bfloat16)
    hw2 = jnp.dot(h1, w2_ref[...],
                  preferred_element_type=jnp.float32).astype(jnp.bfloat16)
    z = jnp.dot(a, hw2, preferred_element_type=jnp.float32) + b2_ref[...]
    o_ref[...] = jax.nn.sigmoid(z).astype(o_ref.dtype)


def linear_kernel(x_ref, w_ref, o_ref, acc_ref):
    """K-tiled feature transform: o = X @ W (f32 accumulator, bf16 out)."""
    k = pl.program_id(1)

    @pl.when(k == 0)
    def _():
        acc_ref[...] = jnp.zeros_like(acc_ref)

    acc_ref[...] += jnp.dot(x_ref[...], w_ref[...],
                            preferred_element_type=jnp.float32)

    @pl.when(k == pl.num_programs(1) - 1)
    def _():
        o_ref[...] = acc_ref[...].astype(o_ref.dtype)


def aggregate_kernel(a_ref, xw_ref, b_ref, o_ref, acc_ref, *, activation):
    """K-tiled aggregation: o = act(A @ XW + b).

    a_ref : [tm, tk]  bf16 block of the normalized adjacency (streamed)
    xw_ref: [tk, Hp]  bf16 transformed-feature block (streamed over k)
    b_ref : [1, Hp]   f32 bias (resident)
    acc_ref: [tm, Hp] f32 accumulator scratch
    """
    k = pl.program_id(1)

    @pl.when(k == 0)
    def _():
        acc_ref[...] = jnp.zeros_like(acc_ref)

    acc_ref[...] += jnp.dot(a_ref[...], xw_ref[...],
                            preferred_element_type=jnp.float32)

    @pl.when(k == pl.num_programs(1) - 1)
    def _():
        z = acc_ref[...] + b_ref[...]
        if activation == "relu":
            z = jnp.maximum(z, 0.0)
        else:  # sigmoid: exp lands on the EUP slot (free vs. the MXU-bound body)
            z = jax.nn.sigmoid(z)
        o_ref[...] = z.astype(o_ref.dtype)


# ---------------------------------------------------------------------------
# Sizing helpers
# ---------------------------------------------------------------------------
def _round_up(x, m):
    return (x + m - 1) // m * m


def _vmem_budget_bytes():
    """Generation-aware VMEM budget: ~48 MiB on v7x, capped at 100 MiB elsewhere."""
    cap = 64 * 1024 * 1024
    try:
        info = pltpu.get_tpu_info()
        cap = int(getattr(info, "vmem_capacity_bytes", cap))
    except Exception:
        pass
    return int(min(cap * 3 // 4, 100 * 1024 * 1024))


def _fused_fits(n, f, hp, cp, budget):
    """Can the whole forward sit resident in VMEM (single fused pallas_call)?"""
    if n % 8 != 0:
        return False
    need = (n * n * 2          # A (bf16)
            + n * f * 2        # X
            + f * hp * 2       # W1
            + hp * cp * 2      # W2
            + (hp + cp) * 4    # biases
            + 3 * n * hp * 4   # xw1 / h1 / hw2 intermediates (f32 slack)
            + n * cp * 2)      # out
    return 2 * need + (4 << 20) <= budget


def _pick_tiles(rows, contract, width, out_bytes, budget):
    """Biggest (row_tile, k_tile) whose 2-buffered footprint fits the budget."""
    def cands(dim):
        cs = [t for t in (2048, 1024, 512, 256, 128) if t <= dim and dim % t == 0]
        return cs or [dim]

    def fits(tm, tk):
        stream = 2 * tm * tk * 2            # streamed bf16 block, double-buffered
        res = 2 * tk * width * 2            # second operand block, double-buffered
        outb = 2 * tm * width * out_bytes   # output block, double-buffered
        acc = tm * width * 4                # f32 accumulator scratch
        return stream + res + outb + acc + (2 << 20) <= budget

    tms, tks = cands(rows), cands(contract)
    for tm in tms:
        for tk in tks:
            if fits(tm, tk):
                return tm, tk
    return tms[-1], tks[-1]


# ---------------------------------------------------------------------------
# pallas_call wrappers
# ---------------------------------------------------------------------------
def _fused_forward(a_bf, x_bf, w1p, b1p, w2p, b2p, cp, budget):
    n = a_bf.shape[0]
    return pl.pallas_call(
        fused_gcn_kernel,
        out_shape=jax.ShapeDtypeStruct((n, cp), jnp.bfloat16),
        compiler_params=pltpu.CompilerParams(vmem_limit_bytes=budget),
    )(a_bf, x_bf, w1p, b1p, w2p, b2p)


def _linear(x_bf, w_bf, *, budget, row_tile=None, k_tile=None):
    n, f = x_bf.shape
    hp = w_bf.shape[1]
    tm, tk = _pick_tiles(n, f, hp, out_bytes=2, budget=budget)
    if row_tile is not None and n % row_tile == 0:
        tm = row_tile
    if k_tile is not None and f % k_tile == 0:
        tk = k_tile
    return pl.pallas_call(
        linear_kernel,
        out_shape=jax.ShapeDtypeStruct((n, hp), jnp.bfloat16),
        grid_spec=pltpu.PrefetchScalarGridSpec(
            num_scalar_prefetch=0,
            grid=(n // tm, f // tk),
            in_specs=[
                pl.BlockSpec((tm, tk), lambda i, k: (i, k)),
                pl.BlockSpec((tk, hp), lambda i, k: (k, 0)),
            ],
            out_specs=pl.BlockSpec((tm, hp), lambda i, k: (i, 0)),
            scratch_shapes=[pltpu.VMEM((tm, hp), jnp.float32)],
        ),
        compiler_params=pltpu.CompilerParams(
            dimension_semantics=("parallel", "arbitrary"),
            vmem_limit_bytes=budget,
        ),
        cost_estimate=pl.CostEstimate(
            flops=2 * n * f * hp,
            transcendentals=0,
            bytes_accessed=2 * (n * f + f * hp + n * hp),
        ),
    )(x_bf, w_bf)


def _aggregate(a_bf, xw_bf, b, *, activation, budget, row_tile=None, k_tile=None):
    n, kdim = a_bf.shape
    hp = xw_bf.shape[1]
    tm, tk = _pick_tiles(n, kdim, hp, out_bytes=2, budget=budget)
    if row_tile is not None and n % row_tile == 0:
        tm = row_tile
    if k_tile is not None and kdim % k_tile == 0:
        tk = k_tile
    kernel = functools.partial(aggregate_kernel, activation=activation)
    return pl.pallas_call(
        kernel,
        out_shape=jax.ShapeDtypeStruct((n, hp), jnp.bfloat16),
        grid_spec=pltpu.PrefetchScalarGridSpec(
            num_scalar_prefetch=0,
            grid=(n // tm, kdim // tk),
            in_specs=[
                pl.BlockSpec((tm, tk), lambda i, k: (i, k)),   # A block streams
                pl.BlockSpec((tk, hp), lambda i, k: (k, 0)),   # XW block streams
                pl.BlockSpec((1, hp), lambda i, k: (0, 0)),    # bias resident
            ],
            out_specs=pl.BlockSpec((tm, hp), lambda i, k: (i, 0)),
            scratch_shapes=[pltpu.VMEM((tm, hp), jnp.float32)],
        ),
        compiler_params=pltpu.CompilerParams(
            dimension_semantics=("parallel", "arbitrary"),
            vmem_limit_bytes=budget,
        ),
        cost_estimate=pl.CostEstimate(
            flops=2 * n * kdim * hp,
            transcendentals=n * hp if activation == "sigmoid" else 0,
            bytes_accessed=2 * (n * kdim + kdim * hp + n * hp) + 4 * hp,
        ),
    )(a_bf, xw_bf, b)


# ---------------------------------------------------------------------------
# Forward pass
# ---------------------------------------------------------------------------
def gcn_forward(a_hat, x, w1, b1, w2, b2, *, force_tiled=False,
                row_tile=None, k_tile=None):
    """relu(GCNConv1) -> GCNConv2 -> sigmoid, with dense normalized adjacency."""
    n, f = x.shape
    h = w1.shape[1]
    c = w2.shape[1]

    # Lane-dense padded widths. Keep at exactly 128: the kernel is HBM-bound on A,
    # padding wider only wastes FLOPs / VMEM (perf review).
    hp = _round_up(max(h, 128), 128)
    cp = _round_up(max(c, 128), 128)
    budget = _vmem_budget_bytes()

    # bf16 operands; f32 accumulation happens inside the kernels.
    a_bf = a_hat.astype(jnp.bfloat16)
    x_bf = x.astype(jnp.bfloat16)
    w1p = jnp.zeros((f, hp), jnp.bfloat16).at[:, :h].set(w1.astype(jnp.bfloat16))
    b1p = jnp.zeros((1, hp), jnp.float32).at[:, :h].set(
        b1.reshape(1, -1).astype(jnp.float32))
    w2p = jnp.zeros((hp, cp), jnp.bfloat16).at[:h, :c].set(w2.astype(jnp.bfloat16))
    b2p = jnp.zeros((1, cp), jnp.float32).at[:, :c].set(
        b2.reshape(1, -1).astype(jnp.float32))

    # --- Small-N fast path: one fused pallas_call for the whole forward. ---
    if not force_tiled and _fused_fits(n, f, hp, cp, budget):
        out = _fused_forward(a_bf, x_bf, w1p, b1p, w2p, b2p, cp, budget)
        return out[:, :c].astype(jnp.float32)

    # --- Large-N tiled path: K-tiled linear + aggregation per layer. ---
    np_ = _round_up(n, 128)
    fp_ = _round_up(f, 128)
    a_p = jnp.zeros((np_, np_), jnp.bfloat16).at[:n, :n].set(a_bf)
    x_p = jnp.zeros((np_, fp_), jnp.bfloat16).at[:n, :f].set(x_bf)
    w1pp = jnp.zeros((fp_, hp), jnp.bfloat16).at[:f, :].set(w1p)

    # Layer 1: H = relu(A_hat @ (X @ W1) + b1)
    xw1 = _linear(x_p, w1pp, budget=budget, row_tile=row_tile, k_tile=k_tile)
    h1 = _aggregate(a_p, xw1, b1p, activation="relu", budget=budget,
                    row_tile=row_tile, k_tile=k_tile)

    # Layer 2: out = sigmoid(A_hat @ (H @ W2) + b2)
    hw2 = _linear(h1, w2p, budget=budget, row_tile=row_tile, k_tile=k_tile)
    out = _aggregate(a_p, hw2, b2p, activation="sigmoid", budget=budget,
                     row_tile=row_tile, k_tile=k_tile)

    return out[:n, :c].astype(jnp.float32)


def gcn_norm_dense(edge_index, num_nodes, dtype=jnp.bfloat16):
    """Dense equivalent of torch_geometric's gcn_norm (add self loops,
    symmetric D^-1/2 (A+I) D^-1/2 with in-degree).  Built directly in `dtype`
    so no f32 N^2 intermediate is materialized."""
    src = edge_index[0]
    dst = edge_index[1]
    ones = jnp.ones(src.shape, jnp.float32)
    deg = jnp.zeros((num_nodes,), jnp.float32).at[dst].add(ones) + 1.0
    dinv = jnp.where(deg > 0, jax.lax.rsqrt(deg), 0.0)
    vals = (dinv[dst] * dinv[src]).astype(dtype)
    a = jnp.zeros((num_nodes, num_nodes), dtype)
    a = a.at[dst, src].add(vals)                            # edges (duplicates sum)
    idx = jnp.arange(num_nodes)
    a = a.at[idx, idx].add((dinv * dinv).astype(dtype))     # self-loops
    return a


# ---------------------------------------------------------------------------
# Demo / validation
# ---------------------------------------------------------------------------
def _make_problem(key, num_nodes, num_edges, hidden, num_classes):
    k_edges, k_x, k_w1, k_b1, k_w2, k_b2 = jax.random.split(key, 6)
    num_features = num_nodes  # original script sets num_features = num_nodes
    edge_index = jax.random.randint(k_edges, (2, num_edges), 0, num_nodes,
                                    dtype=jnp.int32)
    x = jax.random.normal(k_x, (num_nodes, num_features), jnp.float32)
    w1 = jax.random.normal(k_w1, (num_features, hidden), jnp.float32) * 0.1
    b1 = jax.random.normal(k_b1, (1, hidden), jnp.float32) * 0.1
    w2 = jax.random.normal(k_w2, (hidden, num_classes), jnp.float32) * 0.1
    b2 = jax.random.normal(k_b2, (1, num_classes), jnp.float32) * 0.1
    return edge_index, x, w1, b1, w2, b2


def _reference(edge_index, x, w1, b1, w2, b2, num_nodes):
    a_f32 = gcn_norm_dense(edge_index, num_nodes, dtype=jnp.float32)
    h_ref = jnp.maximum(a_f32 @ (x @ w1) + b1, 0.0)
    return jax.nn.sigmoid(a_f32 @ (h_ref @ w2) + b2)


if __name__ == "__main__":
    key = jax.random.PRNGKey(0)
    k_small, k_big = jax.random.split(key, 2)

    hidden, num_classes = 30, 1

    # --- Small-N demo (fused single-kernel path). ---
    n1 = 64
    edge_index, x, w1, b1, w2, b2 = _make_problem(k_small, n1, 256, hidden,
                                                  num_classes)
    a_hat = gcn_norm_dense(edge_index, n1)               # bf16 directly
    out = gcn_forward(a_hat, x, w1, b1, w2, b2)
    out = jax.block_until_ready(out)
    ref = _reference(edge_index, x, w1, b1, w2, b2, n1)
    assert out.shape == (n1, num_classes)
    err1 = float(jnp.max(jnp.abs(out - ref)))
    assert err1 < 3e-2, f"fused path max abs err {err1}"

    # --- Larger config forcing the tiled (K-tiled) path with multi-step grids. ---
    n2 = 256
    edge_index2, x2, w1_2, b1_2, w2_2, b2_2 = _make_problem(k_big, n2, 2048,
                                                            hidden, num_classes)
    a_hat2 = gcn_norm_dense(edge_index2, n2)
    out2 = gcn_forward(a_hat2, x2, w1_2, b1_2, w2_2, b2_2,
                       force_tiled=True, row_tile=128, k_tile=128)
    out2 = jax.block_until_ready(out2)
    ref2 = _reference(edge_index2, x2, w1_2, b1_2, w2_2, b2_2, n2)
    assert out2.shape == (n2, num_classes)
    err2 = float(jnp.max(jnp.abs(out2 - ref2)))
    assert err2 < 3e-2, f"tiled path max abs err {err2}"

    print("KERNEL_OK")
</pallas_src>

<mosaic_0001>
module attributes {stable_mosaic.version = 11 : i64} {
  func.func @fused_gcn_kernel(%arg0: memref<64x64xbf16, #tpu.memory_space<vmem>>, %arg1: memref<64x64xbf16, #tpu.memory_space<vmem>>, %arg2: memref<64x128xbf16, #tpu.memory_space<vmem>>, %arg3: memref<1x128xf32, #tpu.memory_space<vmem>>, %arg4: memref<128x128xbf16, #tpu.memory_space<vmem>>, %arg5: memref<1x128xf32, #tpu.memory_space<vmem>>, %arg6: memref<64x128xbf16, #tpu.memory_space<vmem>>) attributes {dimension_semantics = [], scalar_prefetch = 0 : i64, scratch_operands = 0 : i64, tpu.core_type = #tpu.core_type<tc>} {
    %c0 = arith.constant 0 : index
    %c0_0 = arith.constant 0 : index
    %0 = vector.load %arg0[%c0, %c0_0] : memref<64x64xbf16, #tpu.memory_space<vmem>>, vector<64x64xbf16>
    %c0_1 = arith.constant 0 : index
    %c0_2 = arith.constant 0 : index
    %1 = vector.load %arg1[%c0_1, %c0_2] : memref<64x64xbf16, #tpu.memory_space<vmem>>, vector<64x64xbf16>
    %c0_3 = arith.constant 0 : index
    %c0_4 = arith.constant 0 : index
    %2 = vector.load %arg2[%c0_3, %c0_4] : memref<64x128xbf16, #tpu.memory_space<vmem>>, vector<64x128xbf16>
    %cst = arith.constant dense<0.000000e+00> : vector<64x128xf32>
    %3 = tpu.matmul %1, %2, %cst {dimension_numbers = #tpu.dot_dimension_numbers<[1], [0], [0], [1], [0, 0, 1, 1], [], []>} : vector<64x64xbf16>, vector<64x128xbf16>, vector<64x128xf32> -> vector<64x128xf32>
    %4 = arith.truncf %3 : vector<64x128xf32> to vector<64x128xbf16>
    %cst_5 = arith.constant dense<0.000000e+00> : vector<64x128xf32>
    %5 = tpu.matmul %0, %4, %cst_5 {dimension_numbers = #tpu.dot_dimension_numbers<[1], [0], [0], [1], [0, 0, 1, 1], [], []>} : vector<64x64xbf16>, vector<64x128xbf16>, vector<64x128xf32> -> vector<64x128xf32>
    %c0_6 = arith.constant 0 : index
    %c0_7 = arith.constant 0 : index
    %6 = vector.load %arg3[%c0_6, %c0_7] : memref<1x128xf32, #tpu.memory_space<vmem>>, vector<1x128xf32>
    %7 = vector.broadcast %6 : vector<1x128xf32> to vector<64x128xf32>
    %8 = arith.addf %5, %7 : vector<64x128xf32>
    %cst_8 = arith.constant 0.000000e+00 : f32
    %9 = vector.broadcast %cst_8 : f32 to vector<64x128xf32>
    %10 = arith.maximumf %8, %9 : vector<64x128xf32>
    %11 = arith.truncf %10 : vector<64x128xf32> to vector<64x128xbf16>
    %c0_9 = arith.constant 0 : index
    %c0_10 = arith.constant 0 : index
    %12 = vector.load %arg4[%c0_9, %c0_10] : memref<128x128xbf16, #tpu.memory_space<vmem>>, vector<128x128xbf16>
    %cst_11 = arith.constant dense<0.000000e+00> : vector<64x128xf32>
    %13 = tpu.matmul %11, %12, %cst_11 {dimension_numbers = #tpu.dot_dimension_numbers<[1], [0], [0], [1], [0, 0, 1, 1], [], []>} : vector<64x128xbf16>, vector<128x128xbf16>, vector<64x128xf32> -> vector<64x128xf32>
    %14 = arith.truncf %13 : vector<64x128xf32> to vector<64x128xbf16>
    %cst_12 = arith.constant dense<0.000000e+00> : vector<64x128xf32>
    %15 = tpu.matmul %0, %14, %cst_12 {dimension_numbers = #tpu.dot_dimension_numbers<[1], [0], [0], [1], [0, 0, 1, 1], [], []>} : vector<64x64xbf16>, vector<64x128xbf16>, vector<64x128xf32> -> vector<64x128xf32>
    %c0_13 = arith.constant 0 : index
    %c0_14 = arith.constant 0 : index
    %16 = vector.load %arg5[%c0_13, %c0_14] : memref<1x128xf32, #tpu.memory_space<vmem>>, vector<1x128xf32>
    %17 = vector.broadcast %16 : vector<1x128xf32> to vector<64x128xf32>
    %18 = arith.addf %15, %17 : vector<64x128xf32>
    %19 = arith.negf %18 : vector<64x128xf32>
    %20 = math.exp %19 : vector<64x128xf32>
    %cst_15 = arith.constant 1.000000e+00 : f32
    %21 = vector.broadcast %cst_15 : f32 to vector<64x128xf32>
    %22 = arith.addf %21, %20 : vector<64x128xf32>
    %23 = arith.divf %21, %22 : vector<64x128xf32>
    %24 = arith.truncf %23 : vector<64x128xf32> to vector<64x128xbf16>
    %c0_16 = arith.constant 0 : index
    %c0_17 = arith.constant 0 : index
    %25 = vector.load %arg6[%c0_16, %c0_17] : memref<64x128xbf16, #tpu.memory_space<vmem>>, vector<64x128xbf16>
    tpu.vector_store %arg6[%c0_16, %c0_17], %24 {strides = array<i32>} : memref<64x128xbf16, #tpu.memory_space<vmem>>, vector<64x128xbf16>,
    return
  }
}

</mosaic_0001>

<bundles_post_ra>
// kernel: tpu_custom_call.1
= control target key start
LH: loop header
LB: loop body
LE: loop exit
PB: predicated region body
PF: predicated region fallthrough
CT: control target
= control target key end

     0   :  { %11 = vsyncpa [#allocation3], 0  ;;  %s1116_s0 = inlined_call_operand.hbm [shape: bf16[64,64], index: 0, kind: input, shape index: {}]   ;;  %s1117_s1 = inlined_call_operand.hbm [shape: bf16[64,64], index: 1, kind: input, shape index: {}]   ;;  %s1118_s2 = inlined_call_operand.hbm [shape: bf16[64,128], index: 2, kind: input, shape index: {}]   ;;  %s1119_s3 = inlined_call_operand.vmem [shape: f32[1,128], index: 3, kind: input, shape index: {}]   ;;  %s1120_s4 = inlined_call_operand.hbm [shape: bf16[128,128], index: 4, kind: input, shape index: {}]   ;;  %s1121_s5 = inlined_call_operand.vmem [shape: f32[1,128], index: 5, kind: input, shape index: {}]   ;;  %s1122_s6 = inlined_call_operand.hbm [shape: bf16[64,128], index: 6, kind: output, shape index: {}]  }
   0x1   :  { %12 = vsyncpa [#allocation6], 0 }
   0x2   :  { %13 = vsyncpa [#allocation9], 0 }
   0x3   :  { %14 = vsyncpa [#allocation4], 0  ;;  %s1014_s21 = smov [#allocation5]   ;;  %s1015_s23 = smov [#allocation2]  }
   0x4   :  { %s32_s22 = sshll.u32 %s1014_s21, 4  ;;  %s20_s24 = sshll.u32 %s1015_s23, 4  ;;  %s33_s22 = int_to_ptr.vmem [resolvable:$true] %s32_s22  ;;  %s21_s24 = int_to_ptr.vmem [resolvable:$true] %s20_s24 }
   0x5   :  { %s914_s25 = scalar_lea.vmem %s33_s22, 512  ;;  %p919_p1 = scmp.lt.s32.totalorder %s33_s22, %s33_s22 }
   0x6   :  { %p915_p0 = scmp.ne.s32.totalorder %s33_s22, %s914_s25  ;;  %p920_p2 = scmp.lt.s32.totalorder %s914_s25, %s914_s25 }
   0x8   :  { %p921_p3 = por %p920_p2, %p919_p1 }
   0xa   :  { %p922_p4 = pnand %p921_p3, %p915_p0 }
   0xc   :  { %925 = shalt.err (!%p922_p4)
}
   0xd   :  { %s1016_s26 = smov 64   ;;  %s1017_s27 = smov 4  }
   0xe   :  { %38 = dma.hbm_to_vmem [thread:$0]  %s1117_s1, 512, %s33_s22, [#allocation6], %s1016_s26, %s1016_s26, %s1017_s27  }
   0xf   :  { %s934_s30 = scalar_lea.vmem %s21_s24, 512  ;;  %p939_p6 = scmp.lt.s32.totalorder %s21_s24, %s21_s24 }
  0x10   :  { %p935_p5 = scmp.ne.s32.totalorder %s21_s24, %s934_s30  ;;  %p940_p7 = scmp.lt.s32.totalorder %s934_s30, %s934_s30 }
  0x12   :  { %p941_p8 = por %p940_p7, %p939_p6 }
  0x14   :  { %p942_p9 = pnand %p941_p8, %p935_p5 }
  0x16   :  { %945 = shalt.err (!%p942_p9)
}
  0x17   :  { %26 = dma.hbm_to_vmem [thread:$0]  %s1116_s0, 512, %s21_s24, [#allocation3], %s1016_s26, %s1016_s26, %s1017_s27  }
  0x18   :  { %s1018_s9 = smov [#allocation7]   ;;  %s1019_s11 = smov [#allocation8]  }
  0x19   :  { %s44_s10 = sshll.u32 %s1018_s9, 4  ;;  %s58_s12 = sshll.u32 %s1019_s11, 4  ;;  %s45_s10 = int_to_ptr.vmem [resolvable:$true] %s44_s10  ;;  %s59_s12 = int_to_ptr.vmem [resolvable:$true] %s58_s12 }
  0x1a   :  { %s954_s1 = scalar_lea.vmem %s45_s10, 512  ;;  %p959_p11 = scmp.lt.s32.totalorder %s45_s10, %s45_s10 }
  0x1b   :  { %p955_p10 = scmp.ne.s32.totalorder %s45_s10, %s954_s1  ;;  %p960_p12 = scmp.lt.s32.totalorder %s954_s1, %s954_s1 }
  0x1d   :  { %p961_p13 = por %p960_p12, %p959_p11 }
  0x1f   :  { %p962_p0 = pnand %p961_p13, %p955_p10 }
  0x21   :  { %965 = shalt.err (!%p962_p0)
}
  0x22   :  { %50 = dma.hbm_to_vmem [thread:$0]  %s1118_s2, 512, %s45_s10, [#allocation6], %s1016_s26, %s1016_s26, %s1017_s27  }
  0x23   :  { %s974_s0 = scalar_lea.vmem %s59_s12, 1024  ;;  %p979_p2 = scmp.lt.s32.totalorder %s59_s12, %s59_s12 }
  0x24   :  { %p975_p1 = scmp.ne.s32.totalorder %s59_s12, %s974_s0  ;;  %p980_p3 = scmp.lt.s32.totalorder %s974_s0, %s974_s0 }
  0x26   :  { %p981_p4 = por %p980_p3, %p979_p2 }
  0x28   :  { %p982_p5 = pnand %p981_p4, %p975_p1 }
  0x2a   :  { %985 = shalt.err (!%p982_p5)
}
  0x2b   :  { %64 = dma.hbm_to_vmem [thread:$0]  %s1120_s4, 1024, %s59_s12, [#allocation9], %s1016_s26, %s1016_s26, %s1017_s27  }
  0x2c   :  { %1006 = dma.done.wait [#allocation3], 512  }
  0x2d   :  { %1007 = vsyncadd [#allocation3], 4294966784 }
  0x2e   :  { %1008 = dma.done.wait [#allocation6], 1024  }
  0x2f   :  { %1009 = vsyncadd [#allocation6], 4294966272 }
  0x30   :  { %1010 = dma.done.wait [#allocation9], 1024  }
  0x31   :  { %1011 = vsyncadd [#allocation9], 4294966272  ;;  %v854_v0 = vld [vmem:[#allocation7 + $0x18] sm:$0xff]   ;;  %v855_v1 = vld [vmem:[#allocation7 + $0x10] sm:$0xff]   ;;  %vm148_vm0 = vcmask 523264  }
  0x32   :  { %775 = vmatprep.subr.bf16.mxu0 %v854_v0  ;;  %v856_v2 = vld [vmem:[#allocation7 + $0x8] sm:$0xff]   ;;  %v858_v3 = vld [vmem:[#allocation5] sm:$0xff]   ;;  %v860_v6 = vld [vmem:[#allocation5 + $0x10] sm:$0xff]  }
  0x33   :  { %776 = vmatpush3.bf16.msra.mxu0 %v854_v0  ;;  %783 = vmatprep.mubr.msk.bf16.mxu0 %vm148_vm0, %v858_v3  ;;  %v857_v4 = vld [vmem:[#allocation7] sm:$0xff]   ;;  %v859_v5 = vld [vmem:[#allocation5 + $0x8] sm:$0xff]   ;;  %v861_v7 = vld [vmem:[#allocation5 + $0x18] sm:$0xff]  }
  0x34   :  { %777 = vmatprep.subr.bf16.mxu0 %v855_v1  ;;  %v862_v8 = vld [vmem:[#allocation2] sm:$0xff]   ;;  %v866_v9 = vld [vmem:[#allocation8 + $0x38] sm:$0xff]   ;;  %v867_v10 = vld [vmem:[#allocation8 + $0x30] sm:$0xff]  }
  0x35   :  { %799 = vmatprep.mubr.msk.bf16.mxu1 %vm148_vm0, %v862_v8  ;;  %v868_v11 = vld [vmem:[#allocation8 + $0x28] sm:$0xff]   ;;  %v869_v12 = vld [vmem:[#allocation8 + $0x20] sm:$0xff]   ;;  %v870_v13 = vld [vmem:[#allocation8 + $0x18] sm:$0xff]  }
  0x36   :  { %v1085_v26 = vld [vmem:[#allocation2 + $0x8] sm:$0xff]   ;;  %v1087_v27 = vld [vmem:[#allocation2 + $0x10] sm:$0xff]   ;;  %v1093_v28 = vld [vmem:[#allocation2 + $0x18] sm:$0xff]  }
  0x37   :  { %778 = vmatpush3.bf16.msra.mxu0 %v855_v1  ;;  %v871_v29 = vld [vmem:[#allocation8 + $0x10] sm:$0xff]   ;;  %v872_v30 = vld [vmem:[#allocation8 + $0x8] sm:$0xff]   ;;  %v873_v31 = vld [vmem:[#allocation8] sm:$0xff]  }
  0x38   :  { %779 = vmatprep.subr.bf16.mxu0 %v856_v2  ;;  %v670_v34 = vld [vmem:[%s1119_s3] ss:$0 sm:$0xff] }
  0x3b   :  { %780 = vmatpush3.bf16.msra.mxu0 %v856_v2 }
  0x3c   :  { %781 = vmatprep.subr.bf16.mxu0 %v857_v4 }
  0x3f   :  { %782 = vmatpush3.bf16.msra.mxu0 %v857_v4 }
  0x40   :  { %807 = vmatprep.subr.bf16.mxu0 %v866_v9 }
  0x42   :  { %784 = vmatmul.mubr.msk.bf16.vlgmr.msra.gmra.mxu0 %vm148_vm0, %v859_v5 }
  0x43   :  { %787 = vmatprep.mubr.msk.bf16.mxu0 %vm148_vm0, %v860_v6  ;;  %808 = vmatpush3.bf16.msra.mxu0 %v866_v9  ;;  %v687_v9 = vld [vmem:[%s1121_s5] ss:$0 sm:$0xff]  ;;  %s1020_s5 = smov [#allocation10]  }
  0x44   :  { %809 = vmatprep.subr.bf16.mxu0 %v867_v10  ;;  %s644_s18 = sshll.u32 %s1020_s5, 4  ;;  %s645_s18 = int_to_ptr.vmem [resolvable:$true] %s644_s18 }
  0x45   :  { %s986_s19 = scalar_lea.vmem %s645_s18, 512  ;;  %p991_p7 = scmp.lt.s32.totalorder %s645_s18, %s645_s18 }
  0x46   :  { %p987_p6 = scmp.ne.s32.totalorder %s645_s18, %s986_s19  ;;  %p992_p8 = scmp.lt.s32.totalorder %s986_s19, %s986_s19 }
  0x47   :  { %810 = vmatpush3.bf16.msra.mxu0 %v867_v10 }
  0x48   :  { %811 = vmatprep.subr.bf16.mxu0 %v868_v11  ;;  %p993_p9 = por %p992_p8, %p991_p7 }
  0x4a   :  { %788 = vmatmul.mubr.msk.bf16.gmra.mxu0 %vm148_vm0, %v861_v7  ;;  %p994_p10 = pnand %p993_p9, %p987_p6 }
  0x4b   :  { %812 = vmatpush3.bf16.msra.mxu0 %v868_v11 }
  0x4c   :  { %813 = vmatprep.subr.bf16.mxu0 %v869_v12 }
  0x4f   :  { %814 = vmatpush3.bf16.msra.mxu0 %v869_v12 }
  0x50   :  { %815 = vmatprep.subr.bf16.mxu0 %v870_v13 }
  0x53   :  { %816 = vmatpush3.bf16.msra.mxu0 %v870_v13 }
  0x54   :  { %817 = vmatprep.subr.bf16.mxu0 %v871_v29 }
  0x57   :  { %818 = vmatpush3.bf16.msra.mxu0 %v871_v29 }
  0x58   :  { %819 = vmatprep.subr.bf16.mxu0 %v872_v30 }
  0x5b   :  { %820 = vmatpush3.bf16.msra.mxu0 %v872_v30 }
  0x5c   :  { %821 = vmatprep.subr.bf16.mxu0 %v873_v31 }
  0x5f   :  { %822 = vmatpush3.bf16.msra.mxu0 %v873_v31 }
 0x102   :  { %v785_v14 = vpop.f32.mrf.mxu0 }
 0x104   :  { %v195_v15 = vpop.f32.mrf.mxu0 }
 0x106   :  { %v786_v16 = vpop.f32.mrf.mxu0 }
 0x107   :  { %v227_v24 = vpack.c.bf16 %v786_v16, %v785_v14 }
 0x108   :  { %v198_v17 = vpop.f32.mrf.mxu0 }
 0x109   :  { %v226_v25 = vpack.c.bf16 %v198_v17, %v195_v15 }
 0x10a   :  { %v789_v18 = vpop.f32.mrf.mxu0 }
 0x10c   :  { %v211_v19 = vpop.f32.mrf.mxu0 }
 0x10e   :  { %v790_v20 = vpop.f32.mrf.mxu0 }
 0x10f   :  { %v229_v21 = vpack.c.bf16 %v790_v20, %v789_v18 }
 0x110   :  { %v214_v22 = vpop.f32.mrf.mxu0 }
 0x111   :  { %v228_v23 = vpack.c.bf16 %v214_v22, %v211_v19  ;;  %791 = vmatprep.subr.bf16.mxu1 %v229_v21 }
 0x112   :  { %792 = vmatpush3.bf16.msra.mxu1 %v229_v21 }
 0x113   :  { %793 = vmatprep.subr.bf16.mxu1 %v228_v23 }
 0x116   :  { %794 = vmatpush3.bf16.msra.mxu1 %v228_v23 }
 0x117   :  { %795 = vmatprep.subr.bf16.mxu1 %v227_v24 }
 0x11a   :  { %796 = vmatpush3.bf16.msra.mxu1 %v227_v24 }
 0x11b   :  { %797 = vmatprep.subr.bf16.mxu1 %v226_v25 }
 0x11e   :  { %798 = vmatpush3.bf16.msra.mxu1 %v226_v25 }
 0x121   :  { %800 = vmatmul.mubr.msk.bf16.vlgmr.msra.gmra.mxu1 %vm148_vm0, %v1085_v26 }
 0x122   :  { %803 = vmatprep.mubr.msk.bf16.mxu1 %vm148_vm0, %v1087_v27 }
 0x129   :  { %804 = vmatmul.mubr.msk.bf16.gmra.mxu1 %vm148_vm0, %v1093_v28 }
 0x12a   :  { %839 = vmatprep.mubr.msk.bf16.mxu1 %vm148_vm0, %v862_v8 }
 0x1e1   :  { %v801_v32 = vpop.f32.mrf.mxu1 }
 0x1e2   :  { %v312_v38 = vadd.f32 %v801_v32, %v670_v34 }
 0x1e3   :  { %v303_v33 = vpop.f32.mrf.mxu1 }
 0x1e4   :  { %v304_v36 = vadd.f32 %v670_v34, %v303_v33  ;;  %v336_v45 = vmax.f32 %v312_v38, 0.0 }
 0x1e5   :  { %v802_v35 = vpop.f32.mrf.mxu1 }
 0x1e6   :  { %v315_v37 = vadd.f32 %v802_v35, %v670_v34  ;;  %v334_v43 = vmax.f32 %v304_v36, 0.0 }
 0x1e7   :  { %v306_v39 = vpop.f32.mrf.mxu1 }
 0x1e8   :  { %v307_v40 = vadd.f32 %v670_v34, %v306_v39  ;;  %v337_v41 = vmax.f32 %v315_v37, 0.0 }
 0x1e9   :  { %v805_v42 = vpop.f32.mrf.mxu1 }
 0x1ea   :  { %v335_v44 = vmax.f32 %v307_v40, 0.0  ;;  %v343_v48 = vpack.c.bf16 %v337_v41, %v336_v45  ;;  %v328_v52 = vadd.f32 %v805_v42, %v670_v34 }
 0x1eb   :  { %v319_v46 = vpop.f32.mrf.mxu1 }
 0x1ec   :  { %v342_v47 = vpack.c.bf16 %v335_v44, %v334_v43  ;;  %v320_v50 = vadd.f32 %v670_v34, %v319_v46  ;;  %v340_v58 = vmax.f32 %v328_v52, 0.0 }
 0x1ed   :  { %v806_v49 = vpop.f32.mrf.mxu1 }
 0x1ee   :  { %v331_v51 = vadd.f32 %v806_v49, %v670_v34  ;;  %823 = vmatprep.mubr.bf16.mxu0 %v342_v47  ;;  %v338_v56 = vmax.f32 %v320_v50, 0.0 }
 0x1ef   :  { %v322_v53 = vpop.f32.mrf.mxu1  ;;  %824 = vmatmul.mubr.bf16.vlgmr.msra.gmra.mxu0 %v343_v48 }
 0x1f0   :  { %v323_v54 = vadd.f32 %v670_v34, %v322_v53  ;;  %v341_v55 = vmax.f32 %v331_v51, 0.0 }
 0x1f2   :  { %v339_v57 = vmax.f32 %v323_v54, 0.0  ;;  %v345_v60 = vpack.c.bf16 %v341_v55, %v340_v58 }
 0x1f4   :  { %v344_v59 = vpack.c.bf16 %v339_v57, %v338_v56 }
 0x1f6   :  { %827 = vmatprep.mubr.bf16.mxu0 %v344_v59 }
 0x1f7   :  { %828 = vmatmul.mubr.bf16.gmra.mxu0 %v345_v60 }
 0x2af   :  { %v825_v61 = vpop.f32.mrf.mxu0 }
 0x2b1   :  { %v444_v62 = vpop.f32.mrf.mxu0 }
 0x2b3   :  { %v826_v63 = vpop.f32.mrf.mxu0 }
 0x2b4   :  { %v476_v7 = vpack.c.bf16 %v826_v63, %v825_v61 }
 0x2b5   :  { %v447_v0 = vpop.f32.mrf.mxu0 }
 0x2b6   :  { %v475_v8 = vpack.c.bf16 %v447_v0, %v444_v62 }
 0x2b7   :  { %v829_v1 = vpop.f32.mrf.mxu0 }
 0x2b9   :  { %v460_v2 = vpop.f32.mrf.mxu0 }
 0x2bb   :  { %v830_v3 = vpop.f32.mrf.mxu0 }
 0x2bc   :  { %v478_v4 = vpack.c.bf16 %v830_v3, %v829_v1 }
 0x2bd   :  { %v463_v5 = vpop.f32.mrf.mxu0 }
 0x2be   :  { %v477_v6 = vpack.c.bf16 %v463_v5, %v460_v2  ;;  %831 = vmatprep.subr.bf16.mxu1 %v478_v4 }
 0x2bf   :  { %832 = vmatpush3.bf16.msra.mxu1 %v478_v4 }
 0x2c0   :  { %833 = vmatprep.subr.bf16.mxu1 %v477_v6 }
 0x2c3   :  { %834 = vmatpush3.bf16.msra.mxu1 %v477_v6 }
 0x2c4   :  { %835 = vmatprep.subr.bf16.mxu1 %v476_v7 }
 0x2c7   :  { %836 = vmatpush3.bf16.msra.mxu1 %v476_v7 }
 0x2c8   :  { %837 = vmatprep.subr.bf16.mxu1 %v475_v8 }
 0x2cb   :  { %838 = vmatpush3.bf16.msra.mxu1 %v475_v8 }
 0x2ce   :  { %840 = vmatmul.mubr.msk.bf16.vlgmr.msra.gmra.mxu1 %vm148_vm0, %v1085_v26 }
 0x2cf   :  { %843 = vmatprep.mubr.msk.bf16.mxu1 %vm148_vm0, %v1087_v27 }
 0x2d6   :  { %844 = vmatmul.mubr.msk.bf16.gmra.mxu1 %vm148_vm0, %v1093_v28 }
 0x38e   :  { %v841_v10 = vpop.f32.mrf.mxu1 }
 0x38f   :  { %v529_v11 = vadd.f32 %v841_v10, %v687_v9 }
 0x390   :  { %v520_v12 = vpop.f32.mrf.mxu1 }
 0x391   :  { %v694_v13 = vmul.f32 -1.442695, %v529_v11  ;;  %v521_v14 = vadd.f32 %v687_v9, %v520_v12 }
 0x392   :  { %v842_v15 = vpop.f32.mrf.mxu1 }
 0x393   :  { %874 = vpow2.f32 %v694_v13  ;;  %v692_v16 = vmul.f32 -1.442695, %v521_v14  ;;  %v532_v17 = vadd.f32 %v842_v15, %v687_v9 }
 0x394   :  { %v523_v18 = vpop.f32.mrf.mxu1 }
 0x395   :  { %876 = vpow2.f32 %v692_v16  ;;  %v695_v19 = vmul.f32 -1.442695, %v532_v17  ;;  %v524_v20 = vadd.f32 %v687_v9, %v523_v18 }
 0x396   :  { %v845_v21 = vpop.f32.mrf.mxu1 }
 0x397   :  { %878 = vpow2.f32 %v695_v19  ;;  %v693_v22 = vmul.f32 -1.442695, %v524_v20  ;;  %v545_v23 = vadd.f32 %v845_v21, %v687_v9 }
 0x398   :  { %v536_v24 = vpop.f32.mrf.mxu1 }
 0x399   :  { %880 = vpow2.f32 %v693_v22  ;;  %v698_v25 = vmul.f32 -1.442695, %v545_v23  ;;  %v537_v26 = vadd.f32 %v687_v9, %v536_v24 }
 0x39a   :  { %v846_v27 = vpop.f32.mrf.mxu1 }
 0x39b   :  { %882 = vpow2.f32 %v698_v25  ;;  %v696_v28 = vmul.f32 -1.442695, %v537_v26  ;;  %v548_v29 = vadd.f32 %v846_v27, %v687_v9 }
 0x39c   :  { %v539_v30 = vpop.f32.mrf.mxu1 }
 0x39d   :  { %884 = vpow2.f32 %v696_v28  ;;  %v699_v31 = vmul.f32 -1.442695, %v548_v29  ;;  %v540_v32 = vadd.f32 %v687_v9, %v539_v30 }
 0x39f   :  { %886 = vpow2.f32 %v699_v31  ;;  %v697_v33 = vmul.f32 -1.442695, %v540_v32 }
 0x3a0   :  { %v875_v34 = vpop.eup %874 }
 0x3a1   :  { %888 = vpow2.f32 %v697_v33  ;;  %v577_v36 = vadd.f32 1.0, %v875_v34 }
 0x3a2   :  { %v877_v35 = vpop.eup %876 }
 0x3a3   :  { %v575_v38 = vadd.f32 1.0, %v877_v35  ;;  %890 = vrcp.f32 %v577_v36 }
 0x3a4   :  { %v879_v37 = vpop.eup %878 }
 0x3a5   :  { %v578_v39 = vadd.f32 1.0, %v879_v37 }
 0x3a6   :  { %v881_v40 = vpop.eup %880 }
 0x3a7   :  { %892 = vrcp.f32 %v578_v39  ;;  %v576_v41 = vadd.f32 1.0, %v881_v40 }
 0x3a8   :  { %v883_v42 = vpop.eup %882  ;;  %894 = vrcp.f32 %v575_v38 }
 0x3a9   :  { %896 = vrcp.f32 %v576_v41  ;;  %v581_v44 = vadd.f32 1.0, %v883_v42 }
 0x3aa   :  { %v885_v43 = vpop.eup %884 }
 0x3ab   :  { %v579_v46 = vadd.f32 1.0, %v885_v43  ;;  %898 = vrcp.f32 %v581_v44 }
 0x3ac   :  { %v887_v45 = vpop.eup %886 }
 0x3ad   :  { %v582_v47 = vadd.f32 1.0, %v887_v45 }
 0x3ae   :  { %v889_v48 = vpop.eup %888 }
 0x3af   :  { %900 = vrcp.f32 %v582_v47  ;;  %v580_v49 = vadd.f32 1.0, %v889_v48 }
 0x3b0   :  { %902 = vrcp.f32 %v579_v46  ;;  %v891_v50 = vpop.eup %890 }
 0x3b1   :  { %904 = vrcp.f32 %v580_v49 }
 0x3b4   :  { %v893_v51 = vpop.eup %892 }
 0x3b5   :  { %v895_v52 = vpop.eup %894  ;;  %v724_v53 = vpack.c.bf16 %v893_v51, %v891_v50 }
 0x3b6   :  { %v897_v54 = vpop.eup %896 }
 0x3b7   :  { %v719_v55 = vpack.c.bf16 %v897_v54, %v895_v52  ;;  %736 = vst [vmem:[#allocation10 + $0x8] sm:$0xff] %v724_v53  }
 0x3b8   :  { %v899_v56 = vpop.eup %898 }
 0x3b9   :  { %720 = vst [vmem:[#allocation10] sm:$0xff] %v719_v55  }
 0x3bc   :  { %v901_v57 = vpop.eup %900 }
 0x3bd   :  { %v903_v58 = vpop.eup %902  ;;  %v734_v59 = vpack.c.bf16 %v901_v57, %v899_v56 }
 0x3be   :  { %v905_v60 = vpop.eup %904 }
 0x3bf   :  { %v729_v61 = vpack.c.bf16 %v905_v60, %v903_v58  ;;  %738 = vst [vmem:[#allocation10 + $0x18] sm:$0xff] %v734_v59  }
 0x3c1   :  { %737 = vst [vmem:[#allocation10 + $0x10] sm:$0xff] %v729_v61  }
 0x3c2   :  { %997 = shalt.err (!%p994_p10)
}
 0x3c3   :  { %650 = dma.vmem_to_hbm [thread:$0]  %s645_s18, 512, %s1122_s6, [#allocation4], %s1016_s26, %s1016_s26, %s1017_s27  }
 0x3c4   :  { %1012 = dma.done.wait [#allocation4], 512  }
 0x3c5   :  { %1013 = vsyncadd [#allocation4], 4294966784 }
 0x3c6   :  { %654 = vsyncpa [#allocation3], 1 }
 0x3c7   :  { %655 = vsyncpa [#allocation6], 1 }
 0x3c8   :  { %656 = vsyncpa [#allocation9], 1 }
 0x3c9   :  { %657 = vsyncpa [#allocation4], 1 }

</bundles_post_ra>
